<compile_context>
chip_gen: v7x
topology: tpu7x:2x2x1
jax: 0.10.0
libtpu: 0.0.40
codegen_flags: <defaults>
</compile_context>

<pallas_src>
import functools

import numpy as np
import jax
import jax.numpy as jnp
from jax import lax
from jax.experimental import pallas as pl
from jax.experimental.pallas import tpu as pltpu

EPSILON = 1e-09


def _round_up(x, m):
    return (x + m - 1) // m * m


# --------------------------------------------------------------------------- #
# Pallas kernel: one batch tile per grid step; all layers + both branches fused
# into a single first matmul; batched second matmul; full-tile epilogue.
# --------------------------------------------------------------------------- #
def _graph_kernel(x_ref,            # (Bt*T, KDp)          im2col'd input (+1 col, padded)
                  w_ref,            # (KDp, L*2*Fp)         fused conv+linear+bias weights
                  len_ref,          # (Bt, 1, 1) int32      per-batch valid lengths
                  out_ref,          # (Bt, L, T, T) f32
                  *, Bt, T, L, Fp):
    # One fat matmul: full batch tile x (all layers, K and Q branches).
    kq = jnp.dot(x_ref[...], w_ref[...], preferred_element_type=jnp.float32)
    kq = kq.reshape(Bt, T, L * 2 * Fp)                       # aligned leading-dim split

    # Masks rebuilt in-kernel from per-batch lengths (no dense (B,T,T) mask DMA).
    len_b = len_ref[...]                                     # (Bt, 1, 1) int32
    row_i = lax.broadcasted_iota(jnp.int32, (Bt, T, T), 1)
    col_j = lax.broadcasted_iota(jnp.int32, (Bt, T, T), 2)
    valid_i = row_i < len_b
    valid_j = col_j < len_b
    subseq = row_i < col_j                                   # strict causal: i -> j iff i < j
    mask = jnp.logical_and(jnp.logical_and(valid_i, valid_j), subseq)
    tmp = jnp.logical_and(valid_j, len_b > 0)                # pad_mask[b, j, 0], bcast over i
    eps_fill = jnp.where(tmp, 0.0, EPSILON)                  # layer-independent; hoisted

    for l in range(L):                                       # static, small; full tile per iter
        base = l * 2 * Fp
        kl = kq[:, :, base:base + Fp]                        # (Bt, T, Fp)
        ql = kq[:, :, base + Fp:base + 2 * Fp]               # (Bt, T, Fp)

        # kl @ ql^T + graph_bias (bias carried by the augmented constant column).
        g = jnp.einsum('btf,bsf->bts', kl, ql,
                       preferred_element_type=jnp.float32)   # (Bt, T, T)

        # relu path: (relu(G))^2, zero where mask==0, EPSILON on padded columns
        # (fused into one select), normalize over dim i, re-zero masked entries.
        r = jnp.maximum(g, 0.0)
        g3 = jnp.where(mask, r * r, eps_fill)
        z = jnp.sum(g3, axis=1, keepdims=True)               # (Bt, 1, T)
        inv = pl.reciprocal(z, approx=True)                  # EUP slot
        inv = jnp.where(z > 0.0, inv, jnp.inf)               # exact 0/0 -> NaN (matches ref)
        out_ref[:, l, :, :] = jnp.where(mask, g3 * inv, 0.0)


def _pick_batch_tile(B, T, L, KDp, Fp, in_itemsize, budget_bytes):
    """Largest batch tile whose per-step VMEM estimate fits the budget."""
    est = None
    for bt in sorted((d for d in range(1, B + 1) if B % d == 0), reverse=True):
        nbt = B // bt
        x_bytes = in_itemsize * bt * T * KDp * (1 if nbt == 1 else 2)
        w_bytes = in_itemsize * KDp * L * 2 * Fp              # Buffered(1): single copy
        out_bytes = 4 * bt * L * T * T * 2                    # double-buffered output
        tmp_bytes = 4 * bt * T * L * 2 * Fp + 8 * 4 * bt * T * T   # kq + epilogue temps
        est = 2 * (x_bytes + w_bytes + out_bytes + tmp_bytes)      # 2x headroom
        if est <= budget_bytes:
            return bt, est
    return 1, est


def graph_forward(x, lengths, params, *, kernel_sz,
                  matmul_dtype=jnp.bfloat16, vmem_budget_bytes=24 * 2 ** 20):
    """x: (B, T, D) f32, lengths: (B,) int32.  Returns G: (B, L, T, T) f32."""
    B, T, D = x.shape
    L = params['wk'].shape[0]
    Ff = params['lwk'].shape[-1]
    K = kernel_sz
    pad = K // 2
    assert params['wk'].shape[1] == K * D
    # TODO(synk): general T requires padding T to a multiple of 8 (sublane tile).
    assert T % 8 == 0, "T must be a multiple of 8"

    # --- im2col: x_unf[b, t, r*D + d] = x_pad[b, t + r, d];  +1 constant column ---
    x_pad = jnp.pad(x, ((0, 0), (pad, pad), (0, 0)))
    x_unf = jnp.concatenate([x_pad[:, r:r + T, :] for r in range(K)], axis=-1)   # (B,T,K*D)
    x_aug = jnp.concatenate([x_unf, jnp.ones((B, T, 1), x.dtype)], axis=-1)      # (B,T,K*D+1)

    KDp = _round_up(K * D + 1, 128)          # contraction dim -> lane-friendly
    Fa = Ff + 1                              # +1: augmented column carrying graph_bias
    Fp = _round_up(Fa, 32)

    x_aug = jnp.pad(x_aug, ((0, 0), (0, 0), (0, KDp - (K * D + 1))))
    x_aug = x_aug.reshape(B * T, KDp).astype(matmul_dtype)

    # --- Fuse conv -> linear (both are linear maps), fold biases + graph_bias ---
    w_eff_k = jnp.einsum('lkf,lfg->lkg', params['wk'], params['lwk'])            # (L,K*D,Ff)
    w_eff_q = jnp.einsum('lkf,lfg->lkg', params['wq'], params['lwq'])
    b_eff_k = jnp.einsum('lof,lfg->log', params['bk'], params['lwk']) + params['lbk']
    b_eff_q = jnp.einsum('lof,lfg->log', params['bq'], params['lwq']) + params['lbq']

    zcol = jnp.zeros((L, K * D, 1), jnp.float32)
    wk_aug = jnp.concatenate([w_eff_k, zcol], axis=-1)                           # (L,K*D,Fa)
    wq_aug = jnp.concatenate([w_eff_q, zcol], axis=-1)
    bk_aug = jnp.concatenate([b_eff_k, jnp.ones((L, 1, 1), jnp.float32)], axis=-1)
    bq_aug = jnp.concatenate([b_eff_q, params['gb'].reshape(L, 1, 1)], axis=-1)

    wk_full = jnp.concatenate([wk_aug, bk_aug], axis=1)                          # (L,K*D+1,Fa)
    wq_full = jnp.concatenate([wq_aug, bq_aug], axis=1)
    pad_rc = ((0, 0), (0, KDp - (K * D + 1)), (0, Fp - Fa))
    wk_p = jnp.pad(wk_full, pad_rc)                                              # (L,KDp,Fp)
    wq_p = jnp.pad(wq_full, pad_rc)
    w_all = jnp.stack([wk_p, wq_p], axis=2)                                      # (L,KDp,2,Fp)
    w_all = jnp.transpose(w_all, (1, 0, 2, 3)).reshape(KDp, L * 2 * Fp)
    w_all = w_all.astype(matmul_dtype)

    lens3 = lengths.astype(jnp.int32).reshape(B, 1, 1)

    # --- VMEM budget -> batch tile + explicit vmem limit (v7x-safe) ---
    itemsize = jnp.dtype(matmul_dtype).itemsize
    Bt, est = _pick_batch_tile(B, T, L, KDp, Fp, itemsize, vmem_budget_bytes)
    nbt = B // Bt
    vmem_limit = int(min(64 * 2 ** 20, max(32 * 2 ** 20, 2 * est)))

    if nbt == 1:   # constant index map -> no prefetch buffer needed
        x_spec = pl.BlockSpec((Bt * T, KDp), lambda b: (b, 0), pipeline_mode=pl.Buffered(1))
    else:
        x_spec = pl.BlockSpec((Bt * T, KDp), lambda b: (b, 0))
    w_spec = pl.BlockSpec((KDp, L * 2 * Fp), lambda b: (0, 0), pipeline_mode=pl.Buffered(1))
    len_spec = pl.BlockSpec((Bt, 1, 1), lambda b: (b, 0, 0))

    kernel = functools.partial(_graph_kernel, Bt=Bt, T=T, L=L, Fp=Fp)

    grid_spec = pltpu.PrefetchScalarGridSpec(
        num_scalar_prefetch=0,
        grid=(nbt,),
        in_specs=[x_spec, w_spec, len_spec],
        out_specs=pl.BlockSpec((Bt, L, T, T), lambda b: (b, 0, 0, 0)),
    )

    return pl.pallas_call(
        kernel,
        out_shape=jax.ShapeDtypeStruct((B, L, T, T), jnp.float32),
        grid_spec=grid_spec,
        compiler_params=pltpu.CompilerParams(
            dimension_semantics=("parallel",),      # batch tiles shard across TCs on v7x
            vmem_limit_bytes=vmem_limit),
    )(x_aug, w_all, lens3)


# --------------------------------------------------------------------------- #
# Pure-JAX reference (mirrors the torch forward for the 'relu' branch, unfused).
# --------------------------------------------------------------------------- #
def graph_forward_ref(x, pad_mask, params, kernel_sz):
    B, T, D = x.shape
    L = params['wk'].shape[0]
    pad = int(0.5 * kernel_sz)
    xpad = jnp.pad(x, ((0, 0), (pad, pad), (0, 0)))

    row = jnp.arange(T)[:, None]
    col = jnp.arange(T)[None, :]
    subseq = (row < col)[None]                       # (1, T, T)
    pm = pad_mask > 0
    mask = jnp.logical_and(pm, subseq)
    tmp = (pad_mask[:, :, 0] > 0)[:, None, :]        # (B, 1, T)

    Gs = []
    for l in range(L):
        wk = params['wk'][l].reshape(kernel_sz, D, -1)
        wq = params['wq'][l].reshape(kernel_sz, D, -1)
        acc_k = jnp.zeros((B, T, wk.shape[-1]), jnp.float32)
        acc_q = jnp.zeros((B, T, wq.shape[-1]), jnp.float32)
        for r in range(kernel_sz):
            xs = xpad[:, r:r + T, :]
            acc_k = acc_k + jnp.einsum('btd,df->btf', xs, wk[r])
            acc_q = acc_q + jnp.einsum('btd,df->btf', xs, wq[r])
        ki = acc_k + params['bk'][l][None]
        qi = acc_q + params['bq'][l][None]
        kl = jnp.einsum('btf,fg->btg', ki, params['lwk'][l]) + params['lbk'][l][None]
        ql = jnp.einsum('btf,fg->btg', qi, params['lwq'][l]) + params['lbq'][l][None]
        gun = jnp.einsum('btg,bsg->bts', kl, ql) + params['gb'][l, 0, 0]
        r_ = jnp.maximum(gun, 0.0)
        g1 = r_ * r_
        g2 = jnp.where(mask, g1, 0.0)
        g3 = jnp.where(tmp, g2, EPSILON)
        z = jnp.sum(g3, axis=1, keepdims=True)
        g4 = g3 / z
        g5 = jnp.where(mask, g4, 0.0)
        Gs.append(g5)
    return jnp.stack(Gs, axis=1)


# --------------------------------------------------------------------------- #
# Deterministic parameter init (shapes follow Graph.build()).
# --------------------------------------------------------------------------- #
def init_params(key, hp):
    L = hp['n_layers']
    D = hp['embd_sz']
    K = hp['Graph']['kernel_sz']
    Fk = hp['Graph']['n_filter_k']
    Fq = hp['Graph']['n_filter_q']
    Ff = hp['Graph']['linear_feat']
    ks = jax.random.split(key, 9)
    s = 0.1
    return {
        'wk':  s * jax.random.normal(ks[0], (L, K * D, Fk), jnp.float32),
        'bk':  s * jax.random.normal(ks[1], (L, 1, Fk), jnp.float32),
        'wq':  s * jax.random.normal(ks[2], (L, K * D, Fq), jnp.float32),
        'bq':  s * jax.random.normal(ks[3], (L, 1, Fq), jnp.float32),
        'lwk': s * jax.random.normal(ks[4], (L, Fk, Ff), jnp.float32),
        'lbk': s * jax.random.normal(ks[5], (L, 1, Ff), jnp.float32),
        'lwq': s * jax.random.normal(ks[6], (L, Fq, Ff), jnp.float32),
        'lbq': s * jax.random.normal(ks[7], (L, 1, Ff), jnp.float32),
        # torch inits graph_bias to zeros; a nonzero value here exercises the
        # bias-folding path (forward semantics do not depend on the init value).
        'gb':  0.1 * jax.random.normal(ks[8], (L, 1, 1), jnp.float32),
    }


if __name__ == "__main__":
    hparams = {
        'n_layers': 2,
        'embd_sz': 32,
        'Graph': {
            'kernel_sz': 3,
            'n_filter_k': 16,
            'n_filter_q': 16,
            'linear_feat': 16,
            'sparsity_fn': 'relu',
        },
    }
    B, T = 2, 16
    K = hparams['Graph']['kernel_sz']

    key = jax.random.PRNGKey(0)
    k_x, k_p = jax.random.split(key)
    x = jax.random.normal(k_x, (B, T, hparams['embd_sz']), jnp.float32)
    lengths = jnp.array([16, 11], dtype=jnp.int32)
    params = init_params(k_p, hparams)

    # f32 matmul-input path: strict check against the pure-JAX reference.
    G_f32 = graph_forward(x, lengths, params, kernel_sz=K, matmul_dtype=jnp.float32)
    G_f32 = jax.block_until_ready(G_f32)

    valid = (jnp.arange(T)[None, :] < lengths[:, None]).astype(jnp.float32)   # (B, T)
    pad_mask = valid[:, :, None] * valid[:, None, :]                          # (B, T, T)
    G_ref = graph_forward_ref(x, pad_mask, params, K)
    np.testing.assert_allclose(np.asarray(G_f32), np.asarray(G_ref),
                               rtol=1e-2, atol=1e-3)

    # bf16 matmul-input path (default, per perf review): execute + loose smoke check.
    # Full numerical sign-off for bf16 belongs at production shapes (relu()^2 +
    # column-normalize amplifies rounding near zero) -- review correctness note.
    G_bf16 = graph_forward(x, lengths, params, kernel_sz=K)
    G_bf16 = jax.block_until_ready(G_bf16)
    a, b = np.asarray(G_bf16), np.asarray(G_f32)
    comparable = np.isfinite(a) & np.isfinite(b)
    close = ~comparable | np.isclose(a, b, rtol=1e-1, atol=2e-2)
    assert close.mean() > 0.98, f"bf16 matmul path deviates from f32 ({close.mean():.3f} close)"

    print("KERNEL_OK")
</pallas_src>

<mosaic_0001>
module attributes {stable_mosaic.version = 11 : i64} {
  func.func @_graph_kernel(%arg0: i32, %arg1: memref<32x128xf32, #tpu.memory_space<vmem>>, %arg2: memref<128x128xf32, #tpu.memory_space<vmem>>, %arg3: memref<2x1x1xi32, #tpu.memory_space<vmem>>, %arg4: memref<2x2x16x16xf32, #tpu.memory_space<vmem>>) attributes {dimension_semantics = [#tpu.dimension_semantics<parallel>], iteration_bounds = array<i64: 1>, scalar_prefetch = 0 : i64, scratch_operands = 0 : i64, tpu.core_type = #tpu.core_type<tc>, window_params = [{pipeline_mode = #tpu.pipeline_mode<synchronous>, transform_indices = @transform_0, window_bounds = array<i64: 32, 128>}, {pipeline_mode = #tpu.pipeline_mode<synchronous>, transform_indices = @transform_1, window_bounds = array<i64: 128, 128>}, {transform_indices = @transform_2, window_bounds = array<i64: 2, 1, 1>}, {transform_indices = @transform_3, window_bounds = array<i64: 2, 2, 16, 16>}]} {
    %c0 = arith.constant 0 : index
    %c0_0 = arith.constant 0 : index
    %0 = vector.load %arg1[%c0, %c0_0] : memref<32x128xf32, #tpu.memory_space<vmem>>, vector<32x128xf32>
    %c0_1 = arith.constant 0 : index
    %c0_2 = arith.constant 0 : index
    %1 = vector.load %arg2[%c0_1, %c0_2] : memref<128x128xf32, #tpu.memory_space<vmem>>, vector<128x128xf32>
    %cst = arith.constant dense<0.000000e+00> : vector<32x128xf32>
    %2 = tpu.matmul %0, %1, %cst {dimension_numbers = #tpu.dot_dimension_numbers<[1], [0], [0], [1], [0, 0, 1, 1], [], []>} : vector<32x128xf32>, vector<128x128xf32>, vector<32x128xf32> -> vector<32x128xf32>
    %3 = vector.shape_cast %2 : vector<32x128xf32> to vector<2x16x128xf32>
    %c0_3 = arith.constant 0 : index
    %c0_4 = arith.constant 0 : index
    %c0_5 = arith.constant 0 : index
    %4 = vector.load %arg3[%c0_3, %c0_4, %c0_5] : memref<2x1x1xi32, #tpu.memory_space<vmem>>, vector<2x1x1xi32>
    %5 = tpu.iota {dimensions = array<i32: 1>} : vector<2x16x16xi32>
    %6 = tpu.iota {dimensions = array<i32: 2>} : vector<2x16x16xi32>
    %7 = vector.broadcast %4 : vector<2x1x1xi32> to vector<2x16x16xi32>
    %8 = arith.cmpi slt, %5, %7 : vector<2x16x16xi32>
    %9 = vector.broadcast %4 : vector<2x1x1xi32> to vector<2x16x16xi32>
    %10 = arith.cmpi slt, %6, %9 : vector<2x16x16xi32>
    %11 = arith.cmpi slt, %5, %6 : vector<2x16x16xi32>
    %12 = arith.andi %8, %10 : vector<2x16x16xi1>
    %13 = arith.andi %12, %11 : vector<2x16x16xi1>
    %c0_i32 = arith.constant 0 : i32
    %14 = vector.broadcast %c0_i32 : i32 to vector<2x1x1xi32>
    %15 = arith.cmpi sgt, %4, %14 : vector<2x1x1xi32>
    %16 = vector.broadcast %15 : vector<2x1x1xi1> to vector<2x16x16xi1>
    %17 = arith.andi %10, %16 : vector<2x16x16xi1>
    %cst_6 = arith.constant 0.000000e+00 : f32
    %cst_7 = arith.constant 9.99999971E-10 : f32
    %18 = vector.broadcast %cst_6 : f32 to vector<2x16x16xf32>
    %19 = vector.broadcast %cst_7 : f32 to vector<2x16x16xf32>
    %20 = arith.select %17, %18, %19 : vector<2x16x16xi1>, vector<2x16x16xf32>
    %21 = vector.extract_strided_slice %3 {offsets = [0, 0, 0], sizes = [2, 16, 32], strides = [1, 1, 1]} : vector<2x16x128xf32> to vector<2x16x32xf32>
    %22 = vector.extract_strided_slice %3 {offsets = [0, 0, 32], sizes = [2, 16, 32], strides = [1, 1, 1]} : vector<2x16x128xf32> to vector<2x16x32xf32>
    "tpu.trace_start"() <{level = 10 : i32, message = "btf,bsf->bts"}> : () -> ()
    %cst_8 = arith.constant dense<0.000000e+00> : vector<2x16x16xf32>
    %23 = tpu.matmul %21, %22, %cst_8 {dimension_numbers = #tpu.dot_dimension_numbers<[2], [2], [1], [1], [0, 0, 0, 1, 1, 1], [0], [0]>} : vector<2x16x32xf32>, vector<2x16x32xf32>, vector<2x16x16xf32> -> vector<2x16x16xf32>
    "tpu.trace_stop"() : () -> ()
    %cst_9 = arith.constant 0.000000e+00 : f32
    %24 = vector.broadcast %cst_9 : f32 to vector<2x16x16xf32>
    %25 = arith.maximumf %23, %24 : vector<2x16x16xf32>
    %26 = arith.mulf %25, %25 : vector<2x16x16xf32>
    %27 = arith.select %13, %26, %20 : vector<2x16x16xi1>, vector<2x16x16xf32>
    %cst_10 = arith.constant dense<0.000000e+00> : vector<2x16xf32>
    %28 = vector.multi_reduction <add>, %27, %cst_10 [1] : vector<2x16x16xf32> to vector<2x16xf32>
    %29 = vector.shape_cast %28 : vector<2x16xf32> to vector<2x1x16xf32>
    %30 = tpu.reciprocal %29 {approx = true} : vector<2x1x16xf32> -> vector<2x1x16xf32>
    %cst_11 = arith.constant 0.000000e+00 : f32
    %31 = vector.broadcast %cst_11 : f32 to vector<2x1x16xf32>
    %32 = arith.cmpf ogt, %29, %31 : vector<2x1x16xf32>
    %cst_12 = arith.constant 0x7F800000 : f32
    %33 = vector.broadcast %cst_12 : f32 to vector<2x1x16xf32>
    %34 = arith.select %32, %30, %33 : vector<2x1x16xi1>, vector<2x1x16xf32>
    %35 = vector.broadcast %34 : vector<2x1x16xf32> to vector<2x16x16xf32>
    %36 = arith.mulf %27, %35 : vector<2x16x16xf32>
    %cst_13 = arith.constant 0.000000e+00 : f32
    %37 = vector.broadcast %cst_13 : f32 to vector<2x16x16xf32>
    %38 = arith.select %13, %36, %37 : vector<2x16x16xi1>, vector<2x16x16xf32>
    %c0_14 = arith.constant 0 : index
    %c0_15 = arith.constant 0 : index
    %c0_16 = arith.constant 0 : index
    %c0_17 = arith.constant 0 : index
    %39 = vector.load %arg4[%c0_14, %c0_15, %c0_16, %c0_17] : memref<2x2x16x16xf32, #tpu.memory_space<vmem>>, vector<2x1x16x16xf32>
    %40 = vector.shape_cast %39 : vector<2x1x16x16xf32> to vector<2x16x16xf32>
    %41 = vector.shape_cast %38 : vector<2x16x16xf32> to vector<2x1x16x16xf32>
    tpu.vector_store %arg4[%c0_14, %c0_15, %c0_16, %c0_17], %41 {strides = array<i32>} : memref<2x2x16x16xf32, #tpu.memory_space<vmem>>, vector<2x1x16x16xf32>,
    %42 = vector.extract_strided_slice %3 {offsets = [0, 0, 64], sizes = [2, 16, 32], strides = [1, 1, 1]} : vector<2x16x128xf32> to vector<2x16x32xf32>
    %43 = vector.extract_strided_slice %3 {offsets = [0, 0, 96], sizes = [2, 16, 32], strides = [1, 1, 1]} : vector<2x16x128xf32> to vector<2x16x32xf32>
    "tpu.trace_start"() <{level = 10 : i32, message = "btf,bsf->bts"}> : () -> ()
    %cst_18 = arith.constant dense<0.000000e+00> : vector<2x16x16xf32>
    %44 = tpu.matmul %42, %43, %cst_18 {dimension_numbers = #tpu.dot_dimension_numbers<[2], [2], [1], [1], [0, 0, 0, 1, 1, 1], [0], [0]>} : vector<2x16x32xf32>, vector<2x16x32xf32>, vector<2x16x16xf32> -> vector<2x16x16xf32>
    "tpu.trace_stop"() : () -> ()
    %cst_19 = arith.constant 0.000000e+00 : f32
    %45 = vector.broadcast %cst_19 : f32 to vector<2x16x16xf32>
    %46 = arith.maximumf %44, %45 : vector<2x16x16xf32>
    %47 = arith.mulf %46, %46 : vector<2x16x16xf32>
    %48 = arith.select %13, %47, %20 : vector<2x16x16xi1>, vector<2x16x16xf32>
    %cst_20 = arith.constant dense<0.000000e+00> : vector<2x16xf32>
    %49 = vector.multi_reduction <add>, %48, %cst_20 [1] : vector<2x16x16xf32> to vector<2x16xf32>
    %50 = vector.shape_cast %49 : vector<2x16xf32> to vector<2x1x16xf32>
    %51 = tpu.reciprocal %50 {approx = true} : vector<2x1x16xf32> -> vector<2x1x16xf32>
    %cst_21 = arith.constant 0.000000e+00 : f32
    %52 = vector.broadcast %cst_21 : f32 to vector<2x1x16xf32>
    %53 = arith.cmpf ogt, %50, %52 : vector<2x1x16xf32>
    %cst_22 = arith.constant 0x7F800000 : f32
    %54 = vector.broadcast %cst_22 : f32 to vector<2x1x16xf32>
    %55 = arith.select %53, %51, %54 : vector<2x1x16xi1>, vector<2x1x16xf32>
    %56 = vector.broadcast %55 : vector<2x1x16xf32> to vector<2x16x16xf32>
    %57 = arith.mulf %48, %56 : vector<2x16x16xf32>
    %cst_23 = arith.constant 0.000000e+00 : f32
    %58 = vector.broadcast %cst_23 : f32 to vector<2x16x16xf32>
    %59 = arith.select %13, %57, %58 : vector<2x16x16xi1>, vector<2x16x16xf32>
    %c0_24 = arith.constant 0 : index
    %c1 = arith.constant 1 : index
    %c0_25 = arith.constant 0 : index
    %c0_26 = arith.constant 0 : index
    %60 = vector.load %arg4[%c0_24, %c1, %c0_25, %c0_26] : memref<2x2x16x16xf32, #tpu.memory_space<vmem>>, vector<2x1x16x16xf32>
    %61 = vector.shape_cast %60 : vector<2x1x16x16xf32> to vector<2x16x16xf32>
    %62 = vector.shape_cast %59 : vector<2x16x16xf32> to vector<2x1x16x16xf32>
    tpu.vector_store %arg4[%c0_24, %c1, %c0_25, %c0_26], %62 {strides = array<i32>} : memref<2x2x16x16xf32, #tpu.memory_space<vmem>>, vector<2x1x16x16xf32>,
    return
  }
  func.func @transform_0(%arg0: i32) -> (i32, i32) {
    %c0_i32 = arith.constant 0 : i32
    %c0_i32_0 = arith.constant 0 : i32
    return %arg0, %c0_i32 : i32, i32
  }
  func.func @transform_1(%arg0: i32) -> (i32, i32) {
    %c0_i32 = arith.constant 0 : i32
    %c0_i32_0 = arith.constant 0 : i32
    %c0_i32_1 = arith.constant 0 : i32
    return %c0_i32, %c0_i32_0 : i32, i32
  }
  func.func @transform_2(%arg0: i32) -> (i32, i32, i32) {
    %c0_i32 = arith.constant 0 : i32
    %c0_i32_0 = arith.constant 0 : i32
    %c0_i32_1 = arith.constant 0 : i32
    return %arg0, %c0_i32, %c0_i32_0 : i32, i32, i32
  }
  func.func @transform_3(%arg0: i32) -> (i32, i32, i32, i32) {
    %c0_i32 = arith.constant 0 : i32
    %c0_i32_0 = arith.constant 0 : i32
    %c0_i32_1 = arith.constant 0 : i32
    %c0_i32_2 = arith.constant 0 : i32
    return %arg0, %c0_i32, %c0_i32_0, %c0_i32_1 : i32, i32, i32, i32
  }
}

</mosaic_0001>

<bundles_post_ra>
// kernel: tpu_custom_call.1
= control target key start
LH: loop header
LB: loop body
LE: loop exit
PB: predicated region body
PF: predicated region fallthrough
CT: control target
= control target key end

     0   :  { %8 = vsyncpa [#allocation3], 0  ;;  %s1172_s0 = inlined_call_operand.hbm [shape: f32[32,128], index: 0, kind: input, shape index: {}]   ;;  %s1173_s1 = inlined_call_operand.hbm [shape: f32[128,128], index: 1, kind: input, shape index: {}]   ;;  %s1174_s2 = inlined_call_operand.vmem [shape: s32[2,1,1], index: 2, kind: input, shape index: {}]   ;;  %s1175_s3 = inlined_call_operand.hbm [shape: f32[2,2,16,16], index: 3, kind: output, shape index: {}]  }
   0x1   :  { %9 = vsyncpa [#allocation6], 0 }
   0x2   :  { %10 = vsyncpa [#allocation4], 0  ;;  %s972_s12 = smov [#allocation2]   ;;  %s900_s16 = scalar_lea.hbm %s1172_s0, 512 }
   0x3   :  { %s16_s13 = sshll.u32 %s972_s12, 4  ;;  %p901_p0 = scmp.ne.s32.totalorder %s1172_s0, %s900_s16  ;;  %s17_s13 = int_to_ptr.vmem [resolvable:$true] %s16_s13 }
   0x4   :  { %p904_p1 = scmp.lt.u32.totalorder %s900_s16, %s1172_s0 }
   0x6   :  { %p906_p2 = pnand %p904_p1, %p901_p0 }
   0x8   :  { %909 = shalt.err (!%p906_p2)
}
   0x9   :  { %s910_s21 = scalar_lea.vmem %s17_s13, 512  ;;  %p915_p4 = scmp.lt.s32.totalorder %s17_s13, %s17_s13 }
   0xa   :  { %p911_p3 = scmp.ne.s32.totalorder %s17_s13, %s910_s21  ;;  %p916_p5 = scmp.lt.s32.totalorder %s910_s21, %s910_s21 }
   0xc   :  { %p917_p6 = por %p916_p5, %p915_p4 }
   0xe   :  { %p918_p7 = pnand %p917_p6, %p911_p3 }
  0x10   :  { %921 = shalt.err (!%p918_p7)
}
  0x11   :  { %s973_s22 = smov 128   ;;  %s974_s23 = smov 8  }
  0x12   :  { %22 = dma.hbm_to_vmem [thread:$0]  %s1172_s0, 512, %s17_s13, [#allocation3], %s973_s22, %s973_s22, %s974_s23  }
  0x13   :  { %s975_s26 = smov [#allocation5]   ;;  %s922_s30 = scalar_lea.hbm %s1173_s1, 2048 }
  0x14   :  { %s28_s27 = sshll.u32 %s975_s26, 4  ;;  %p923_p8 = scmp.ne.s32.totalorder %s1173_s1, %s922_s30  ;;  %s29_s27 = int_to_ptr.vmem [resolvable:$true] %s28_s27 }
  0x15   :  { %p926_p9 = scmp.lt.u32.totalorder %s922_s30, %s1173_s1 }
  0x17   :  { %p928_p10 = pnand %p926_p9, %p923_p8 }
  0x19   :  { %931 = shalt.err (!%p928_p10)
}
  0x1a   :  { %s932_s8 = scalar_lea.vmem %s29_s27, 2048  ;;  %p937_p12 = scmp.lt.s32.totalorder %s29_s27, %s29_s27 }
  0x1b   :  { %p933_p11 = scmp.ne.s32.totalorder %s29_s27, %s932_s8  ;;  %p938_p13 = scmp.lt.s32.totalorder %s932_s8, %s932_s8 }
  0x1d   :  { %p939_p0 = por %p938_p13, %p937_p12 }
  0x1f   :  { %p940_p1 = pnand %p939_p0, %p933_p11 }
  0x21   :  { %943 = shalt.err (!%p940_p1)
}
  0x22   :  { %34 = dma.hbm_to_vmem [thread:$0]  %s1173_s1, 2048, %s29_s27, [#allocation6], %s973_s22, %s973_s22, %s974_s23  }
  0x23   :  { %966 = dma.done.wait [#allocation3], 512  }
  0x24   :  { %967 = vsyncadd [#allocation3], 4294966784 }
  0x25   :  { %968 = dma.done.wait [#allocation6], 2048  }
  0x26   :  { %969 = vsyncadd [#allocation6], 4294965248  ;;  %v47_v0 = vld [vmem:[#allocation5] sm:$0xff]  ;;  %v48_v1 = vld [vmem:[#allocation5 + $0x8] sm:$0xff]  ;;  %vm215_vm0 = vcmask 261120   ;;  %s976_s1 = smov 32   ;;  %v150_v34 = vlaneseq }
  0x27   :  { %v49_v2 = vld [vmem:[#allocation5 + $0x10] sm:$0xff]  ;;  %v804_v3 = vpack.c.bf16 %v48_v1, %v47_v0  ;;  %v50_v4 = vld [vmem:[#allocation5 + $0x18] sm:$0xff]  ;;  %v51_v6 = vld [vmem:[#allocation5 + $0x20] sm:$0xff]  ;;  %s977_s10 = smov 96   ;;  %s978_s11 = smov 64   ;;  %v979_v36 = vmov 0  }
  0x28   :  { %v808_v5 = vpack.c.bf16 %v50_v4, %v49_v2  ;;  %v52_v7 = vld [vmem:[#allocation5 + $0x28] sm:$0xff]  ;;  %v43_v9 = vld [vmem:[#allocation2] sm:$0xff]  ;;  %v53_v10 = vld [vmem:[#allocation5 + $0x30] sm:$0xff]  ;;  %891 = vset.pattern.permute.xlu1 %v979_v36  ;;  %890 = vset.pattern.permute.xlu0 %v979_v36  ;;  %v1039_v38 = vshrl.u32 %v150_v34, 7 }
  0x29   :  { %805 = vmatprep.subr.bf16.mxu0 %v804_v3  ;;  %v812_v8 = vpack.c.bf16 %v52_v7, %v51_v6  ;;  %v54_v11 = vld [vmem:[#allocation5 + $0x38] sm:$0xff]  ;;  %770 = vmatprep.mubr.f32.mxu0 %v43_v9  ;;  %v55_v13 = vld [vmem:[#allocation5 + $0x40] sm:$0xff]  ;;  %v56_v14 = vld [vmem:[#allocation5 + $0x48] sm:$0xff] }
  0x2a   :  { %807 = vmatpush3.bf16.msra.mxu0 %v804_v3  ;;  %v816_v12 = vpack.c.bf16 %v54_v11, %v53_v10  ;;  %v820_v15 = vpack.c.bf16 %v56_v14, %v55_v13  ;;  %v57_v16 = vld [vmem:[#allocation5 + $0x50] sm:$0xff]  ;;  %v58_v17 = vld [vmem:[#allocation5 + $0x58] sm:$0xff]  ;;  %v59_v19 = vld [vmem:[#allocation5 + $0x60] sm:$0xff]  ;;  %v157_v39 = vsub.s32 0, %v1039_v38  ;;  %v152_v4 = vadd.s32 8, %v1039_v38 }
  0x2b   :  { %809 = vmatprep.subr.bf16.mxu0 %v808_v5  ;;  %v824_v18 = vpack.c.bf16 %v58_v17, %v57_v16  ;;  %v60_v20 = vld [vmem:[#allocation5 + $0x68] sm:$0xff]  ;;  %v61_v22 = vld [vmem:[#allocation5 + $0x70] sm:$0xff]  ;;  %v62_v23 = vld [vmem:[#allocation5 + $0x78] sm:$0xff]  ;;  %v980_v14 = vmov 1e-09  }
  0x2c   :  { %v828_v21 = vpack.c.bf16 %v60_v20, %v59_v19  ;;  %v832_v24 = vpack.c.bf16 %v62_v23, %v61_v22  ;;  %v44_v25 = vld [vmem:[#allocation2 + $0x8] sm:$0xff]  ;;  %v45_v26 = vld [vmem:[#allocation2 + $0x10] sm:$0xff]  ;;  %v46_v27 = vld [vmem:[#allocation2 + $0x18] sm:$0xff] }
  0x2d   :  { %v148_v35 = vld [vmem:[%s1174_s2] sm:$0x1]  ;;  %v149_v37 = vld [vmem:[%s1174_s2 + $0x1] sm:$0x1]  ;;  %vm1044_vm3 = vmpackc.low %vm215_vm0, %vm215_vm0  ;;  %s981_s2 = smov [#allocation7]  }
  0x2e   :  { %811 = vmatpush3.bf16.msra.mxu0 %v808_v5  ;;  %vm185_vm1 = vcmp.gt.s32.totalorder %v148_v35, 0  ;;  %vm186_vm2 = vcmp.gt.s32.totalorder %v149_v37, 0  ;;  %v162_v42 = vrot.slane %v149_v37, %v157_v39  ;;  %v158_v43 = vrot.slane %v148_v35, %v157_v39  ;;  %s673_s16 = sshll.u32 %s981_s2, 4  ;;  %s674_s16 = int_to_ptr.vmem [resolvable:$true] %s673_s16 }
  0x2f   :  { %813 = vmatprep.subr.bf16.mxu0 %v812_v8  ;;  %v187_v40 = vsel %vm185_vm1, 1, %v979_v36  ;;  %v188_v41 = vsel %vm186_vm2, 1, %v979_v36  ;;  %v154_v5 = vand.u32 127, %v150_v34  ;;  %vm400_vm1 = vcmask 130048   ;;  %s944_s17 = scalar_lea.vmem %s674_s16, 1024  ;;  %p949_p3 = scmp.lt.s32.totalorder %s674_s16, %s674_s16 }
  0x30   :  { %v192_v44 = vrot.slane %v187_v40, %v157_v39  ;;  %v196_v45 = vrot.slane %v188_v41, %v157_v39  ;;  %p945_p2 = scmp.ne.s32.totalorder %s674_s16, %s944_s17  ;;  %p950_p4 = scmp.lt.s32.totalorder %s944_s17, %s944_s17 }
  0x31   :  { %vm176_vm9 = vcmp.lt.s32.totalorder %v152_v4, %v154_v5  ;;  %vm175_vm11 = vcmp.lt.s32.totalorder %v1039_v38, %v154_v5 }
  0x32   :  { %815 = vmatpush3.bf16.msra.mxu0 %v812_v8  ;;  %p951_p5 = por %p950_p4, %p949_p3 }
  0x33   :  { %817 = vmatprep.subr.bf16.mxu0 %v816_v12 }
  0x34   :  { %p952_p6 = pnand %p951_p5, %p945_p2 }
  0x36   :  { %819 = vmatpush3.bf16.msra.mxu0 %v816_v12 }
  0x37   :  { %821 = vmatprep.subr.bf16.mxu0 %v820_v15 }
  0x3a   :  { %823 = vmatpush3.bf16.msra.mxu0 %v820_v15 }
  0x3b   :  { %825 = vmatprep.subr.bf16.mxu0 %v824_v18 }
  0x3e   :  { %827 = vmatpush3.bf16.msra.mxu0 %v824_v18 }
  0x3f   :  { %829 = vmatprep.subr.bf16.mxu0 %v828_v21 }
  0x42   :  { %831 = vmatpush3.bf16.msra.mxu0 %v828_v21 }
  0x43   :  { %833 = vmatprep.subr.bf16.mxu0 %v832_v24 }
  0x46   :  { %835 = vmatpush3.bf16.msra.mxu0 %v832_v24 }
  0x49   :  { %771 = vmatmul.mubr.f32.vlgmr.msra.gmra.mrb[0].mxu0 %v44_v25 }
  0x4a   :  { %773 = vmatprep.mubr.f32.mxu0 %v45_v26 }
  0x4d   :  { %774 = vmatmul.mubr.f32.gmra.mrb[2].mxu0 %v46_v27 }
 0x11c   :  { %v772_v28 = vpop.f32.mrb[0].mxu0 }
 0x11d   :  { %v129_v29 = vpop.f32.mrb[1].mxu0 }
 0x11e   :  { %780 = vmatprep.mubr.msk.f32.mxu1 %vm215_vm0, %v129_v29  ;;  %v880_v30 = vpack.i.bf16 %v772_v28, %v129_v29 }
 0x120   :  { %881 = vrot.lane.b32.xlu1 %v880_v30, %s976_s1  ;;  %871 = vrot.lane.b32.xlu0 %v880_v30, %s977_s10  ;;  %v775_v31 = vpop.f32.mrb[2].mxu0 }
 0x121   :  { %v139_v32 = vpop.f32.mrb[3].mxu0 }
 0x122   :  { %v885_v33 = vpack.i.bf16 %v775_v31, %v139_v32 }
 0x124   :  { %886 = vrot.lane.b32.xlu1 %v885_v33, %s976_s1  ;;  %876 = vrot.lane.b32.xlu0 %v885_v33, %s977_s10 }
 0x128   :  { %439 = vrot.lane.b32.xlu1 %v772_v28, %s978_s11  ;;  %437 = vrot.lane.b32.xlu0 %v129_v29, %s978_s11 }
 0x12c   :  { %530 = vrot.lane.b32.xlu1 %v775_v31, %s978_s11  ;;  %528 = vrot.lane.b32.xlu0 %v139_v32, %s978_s11 }
 0x130   :  { %167 = vperm.xlu1 %891, %v162_v42   ;;  %164 = vperm.xlu0 %890, %v158_v43  }
 0x134   :  { %198 = vperm.xlu1 %891, %v192_v44   ;;  %201 = vperm.xlu0 %890, %v196_v45  }
 0x192   :  { %v872_v46 = vpop.permute.xlu0 %871  ;;  %v882_v54 = vpop.permute.xlu1 %881 }
 0x193   :  { %v874_v47 = vunpack.i.h.bf16 %v872_v46  ;;  %v873_v48 = vunpack.i.l.bf16 %v872_v46  ;;  %v884_v56 = vunpack.i.h.bf16 %v882_v54  ;;  %v883_v57 = vunpack.i.l.bf16 %v882_v54 }
 0x195   :  { %v836_v50 = vpack.c.bf16 %v874_v47, %v873_v48  ;;  %v848_v58 = vpack.c.bf16 %v884_v56, %v883_v57 }
 0x196   :  { %v877_v51 = vpop.permute.xlu0 %876  ;;  %v887_v59 = vpop.permute.xlu1 %886 }
 0x197   :  { %v879_v52 = vunpack.i.h.bf16 %v877_v51  ;;  %v878_v53 = vunpack.i.l.bf16 %v877_v51  ;;  %838 = vmatprep.subr.msk.bf16.mxu1 %vm1044_vm3, %v836_v50  ;;  %v889_v60 = vunpack.i.h.bf16 %v887_v59  ;;  %v888_v61 = vunpack.i.l.bf16 %v887_v59 }
 0x198   :  { %841 = vmatpush3.bf16.xpose.msk.msra.mxu1 %vm1044_vm3, %v836_v50 }
 0x199   :  { %v842_v55 = vpack.c.bf16 %v879_v52, %v878_v53  ;;  %v854_v62 = vpack.c.bf16 %v889_v60, %v888_v61 }
 0x19a   :  { %v438_v63 = vpop.permute.xlu0 %437  ;;  %v440_v0 = vpop.permute.xlu1 %439 }
 0x19b   :  { %844 = vmatprep.subr.msk.bf16.mxu1 %vm1044_vm3, %v842_v55 }
 0x19e   :  { %v529_v1 = vpop.permute.xlu0 %528  ;;  %v531_v2 = vpop.permute.xlu1 %530 }
 0x19f   :  { %781 = vmatmul.mubr.msk.f32.vlgmr.msra.gmra.mrb[0].mxu1 %vm215_vm0, %v772_v28 }
 0x1a0   :  { %847 = vmatpush3.bf16.xpose.msk.msra.mxu1 %vm1044_vm3, %v842_v55  ;;  %787 = vmatprep.mubr.msk.f32.mxu1 %vm215_vm0, %v139_v32 }
 0x1a1   :  { %850 = vmatprep.subr.msk.bf16.mxu1 %vm1044_vm3, %v848_v58 }
 0x1a7   :  { %788 = vmatmul.mubr.msk.f32.vlgmr.msra.gmra.mrb[2].mxu1 %vm215_vm0, %v775_v31 }
 0x1a8   :  { %853 = vmatpush3.bf16.xpose.msk.msra.mxu1 %vm1044_vm3, %v848_v58  ;;  %794 = vmatprep.mubr.msk.f32.mxu1 %vm215_vm0, %v438_v63 }
 0x1a9   :  { %856 = vmatprep.subr.msk.bf16.mxu1 %vm1044_vm3, %v854_v62 }
 0x1af   :  { %795 = vmatmul.mubr.msk.f32.vlgmr.msra.gmra.mrb[4].mxu1 %vm215_vm0, %v440_v0  ;;  %v168_v3 = vpop.permute.xlu1 %167  ;;  %v165_v6 = vpop.permute.xlu0 %164 }
 0x1b0   :  { %859 = vmatpush3.bf16.xpose.msk.msra.mxu1 %vm1044_vm3, %v854_v62  ;;  %801 = vmatprep.mubr.msk.f32.mxu1 %vm215_vm0, %v529_v1  ;;  %vm170_vm4 = vcmp.lt.s32.totalorder %v152_v4, %v165_v6  ;;  %vm173_vm5 = vcmp.lt.s32.totalorder %v154_v5, %v165_v6  ;;  %vm169_vm7 = vcmp.lt.s32.totalorder %v1039_v38, %v165_v6 }
 0x1b1   :  { %vm178_vm8 = vmand %vm170_vm4, %vm173_vm5  ;;  %vm172_vm14 = vcmp.lt.s32.totalorder %v152_v4, %v168_v3  ;;  %vm171_vm3 = vcmp.lt.s32.totalorder %v1039_v38, %v168_v3 }
 0x1b2   :  { %vm177_vm12 = vmand %vm169_vm7, %vm173_vm5 }
 0x1b3   :  { %v199_v7 = vpop.permute.xlu1 %198  ;;  %v202_v11 = vpop.permute.xlu0 %201  ;;  %vm1075_vm13 = vmand %vm178_vm8, %vm176_vm9 }
 0x1b4   :  { %vm203_vm6 = vcmp.eq.s32.totalorder %v199_v7, 1  ;;  %vm1081_vm15 = vmand %vm177_vm12, %vm175_vm11  ;;  %vm204_vm2 = vcmp.eq.s32.totalorder %v202_v11, 1 }
 0x1b5   :  { %vm205_vm10 = vmand %vm173_vm5, %vm203_vm6 }
 0x1b6   :  { %v207_v15 = vsel %vm205_vm10, 0.0, %v980_v14 }
 0x1b7   :  { %802 = vmatmul.mubr.msk.f32.vlgmr.msra.gmra.mrb[6].mxu1 %vm215_vm0, %v531_v2  ;;  %vm174_vm0 = vcmp.lt.s32.totalorder %v154_v5, %v168_v3 }
 0x1b8   :  { %vm180_vm4 = vmand %vm172_vm14, %vm174_vm0 }
 0x1b9   :  { %vm206_vm5 = vmand %vm174_vm0, %vm204_vm2 }
 0x1ba   :  { %vm179_vm6 = vmand %vm171_vm3, %vm174_vm0  ;;  %v208_v29 = vsel %vm206_vm5, 0.0, %v980_v14 }
 0x1bb   :  { %vm1099_vm7 = vmand %vm180_vm4, %vm176_vm9 }
 0x1bc   :  { %vm1105_vm8 = vmand %vm179_vm6, %vm175_vm11 }
 0x272   :  { %v782_v8 = vpop.f32.mrb[0].mxu1 }
 0x273   :  { %v389_v9 = vmax.f32 %v782_v8, 0.0  ;;  %v290_v10 = vpop.f32.mrb[1].mxu1 }
 0x274   :  { %v388_v12 = vmax.f32 %v290_v10, 0.0 }
 0x275   :  { %v393_v16 = vmul.f32 %v389_v9, %v389_v9 }
 0x276   :  { %v392_v18 = vmul.f32 %v388_v12, %v388_v12 }
 0x277   :  { %v1088_v19 = vsel %vm1075_vm13, %v393_v16, %v207_v15 }
 0x278   :  { %v1092_v20 = vsel %vm1081_vm15, %v392_v18, %v207_v15  ;;  %v402_v21 = vsel %vm400_vm1, %v1088_v19, 0.0 }
 0x279   :  { %v401_v22 = vsel %vm400_vm1, %v1092_v20, 0.0 }
 0x27a   :  { %v789_v23 = vpop.f32.mrb[2].mxu1  ;;  %v403_v24 = vadd.f32 %v402_v21, %v401_v22 }
 0x27b   :  { %v391_v25 = vmax.f32 %v789_v23, 0.0  ;;  %v379_v26 = vpop.f32.mrb[3].mxu1 }
 0x27c   :  { %v404_v28 = vrot.slane %v403_v24, 4  ;;  %v390_v30 = vmax.f32 %v379_v26, 0.0 }
 0x27d   :  { %v395_v31 = vmul.f32 %v391_v25, %v391_v25 }
 0x27e   :  { %v405_v33 = vadd.f32 %v404_v28, %v403_v24  ;;  %v394_v34 = vmul.f32 %v390_v30, %v390_v30 }
 0x27f   :  { %v1111_v35 = vsel %vm1099_vm7, %v395_v31, %v208_v29 }
 0x280   :  { %v406_v36 = vrot.slane %v405_v33, 2  ;;  %v411_v37 = vsel %vm400_vm1, %v1111_v35, 0.0  ;;  %v398_v39 = vsel %vm1105_vm8, %v394_v34, %v208_v29 }
 0x281   :  { %v410_v40 = vsel %vm400_vm1, %v398_v39, 0.0 }
 0x282   :  { %v407_v38 = vadd.f32 %v406_v36, %v405_v33  ;;  %v412_v41 = vadd.f32 %v411_v37, %v410_v40  ;;  %v796_v42 = vpop.f32.mrb[4].mxu1 }
 0x283   :  { %v620_v43 = vmax.f32 %v796_v42, 0.0  ;;  %v519_v44 = vpop.f32.mrb[5].mxu1 }
 0x284   :  { %v408_v45 = vrot.slane %v407_v38, 1  ;;  %v413_v46 = vrot.slane %v412_v41, 4  ;;  %v619_v47 = vmax.f32 %v519_v44, 0.0 }
 0x285   :  { %v624_v48 = vmul.f32 %v620_v43, %v620_v43 }
 0x286   :  { %v409_v49 = vadd.f32 %v408_v45, %v407_v38  ;;  %v414_v50 = vadd.f32 %v413_v46, %v412_v41  ;;  %v623_v51 = vmul.f32 %v619_v47, %v619_v47 }
 0x287   :  { %v628_v52 = vsel %vm1075_vm13, %v624_v48, %v207_v15 }
 0x288   :  { %892 = vrcp.f32 %v409_v49  ;;  %v415_v53 = vrot.slane %v414_v50, 2  ;;  %v632_v54 = vsel %vm400_vm1, %v628_v52, 0.0  ;;  %v627_v55 = vsel %vm1081_vm15, %v623_v51, %v207_v15 }
 0x289   :  { %v631_v57 = vsel %vm400_vm1, %v627_v55, 0.0  ;;  %vm421_vm9 = vcmp.gt.f32.partialorder %v409_v49, 0.0 }
 0x28a   :  { %v416_v56 = vadd.f32 %v415_v53, %v414_v50  ;;  %v803_v58 = vpop.f32.mrb[6].mxu1  ;;  %v633_v59 = vadd.f32 %v632_v54, %v631_v57 }
 0x28b   :  { %v622_v60 = vmax.f32 %v803_v58, 0.0  ;;  %v610_v61 = vpop.f32.mrb[7].mxu1 }
 0x28c   :  { %v417_v62 = vrot.slane %v416_v56, 1  ;;  %v621_v63 = vmax.f32 %v610_v61, 0.0  ;;  %v634_v0 = vrot.slane %v633_v59, 4 }
 0x28d   :  { %v626_v1 = vmul.f32 %v622_v60, %v622_v60 }
 0x28e   :  { %v418_v2 = vadd.f32 %v417_v62, %v416_v56  ;;  %v625_v3 = vmul.f32 %v621_v63, %v621_v63  ;;  %v635_v4 = vadd.f32 %v634_v0, %v633_v59 }
 0x28f   :  { %v630_v5 = vsel %vm1099_vm7, %v626_v1, %v208_v29 }
 0x290   :  { %894 = vrcp.f32 %v418_v2  ;;  %v641_v6 = vsel %vm400_vm1, %v630_v5, 0.0  ;;  %v629_v7 = vsel %vm1105_vm8, %v625_v3, %v208_v29  ;;  %v636_v8 = vrot.slane %v635_v4, 2 }
 0x291   :  { %v640_v9 = vsel %vm400_vm1, %v629_v7, 0.0  ;;  %vm422_vm10 = vcmp.gt.f32.partialorder %v418_v2, 0.0 }
 0x292   :  { %v893_v10 = vpop.eup %892  ;;  %v642_v11 = vadd.f32 %v641_v6, %v640_v9  ;;  %v637_v14 = vadd.f32 %v636_v8, %v635_v4 }
 0x293   :  { %v423_v12 = vsel %vm421_vm9, %v893_v10, inf }
 0x294   :  { %v425_v15 = vmul.f32 %v423_v12, %v1092_v20  ;;  %v426_v16 = vmul.f32 %v423_v12, %v1088_v19  ;;  %v643_v18 = vrot.slane %v642_v11, 4  ;;  %v638_v21 = vrot.slane %v637_v14, 1 }
 0x296   :  { %v429_v22 = vsel %vm1081_vm15, %v425_v15, 0.0  ;;  %v430_v23 = vsel %vm1075_vm13, %v426_v16, 0.0  ;;  %v644_v24 = vadd.f32 %v643_v18, %v642_v11  ;;  %v639_v25 = vadd.f32 %v638_v21, %v637_v14 }
 0x297   :  { %433 = vst.msk [vmem:[#allocation7] sm:$0xff] %vm400_vm1, %v429_v22  ;;  %434 = vst.msk [vmem:[#allocation7 + $0x8] sm:$0xff] %vm400_vm1, %v430_v23 }
 0x298   :  { %v645_v26 = vrot.slane %v644_v24, 2  ;;  %896 = vrcp.f32 %v639_v25  ;;  %vm651_vm11 = vcmp.gt.f32.partialorder %v639_v25, 0.0 }
 0x29a   :  { %v895_v28 = vpop.eup %894  ;;  %v646_v20 = vadd.f32 %v645_v26, %v644_v24 }
 0x29b   :  { %v424_v19 = vsel %vm422_vm10, %v895_v28, inf }
 0x29c   :  { %v427_v29 = vmul.f32 %v424_v19, %v398_v39  ;;  %v428_v30 = vmul.f32 %v424_v19, %v1111_v35  ;;  %v647_v31 = vrot.slane %v646_v20, 1 }
 0x29e   :  { %v431_v33 = vsel %vm1105_vm8, %v427_v29, 0.0  ;;  %v432_v34 = vsel %vm1099_vm7, %v428_v30, 0.0  ;;  %v648_v36 = vadd.f32 %v647_v31, %v646_v20 }
 0x29f   :  { %435 = vst.msk [vmem:[#allocation7 + $0x20] sm:$0xff] %vm400_vm1, %v431_v33  ;;  %436 = vst.msk [vmem:[#allocation7 + $0x28] sm:$0xff] %vm400_vm1, %v432_v34 }
 0x2a0   :  { %898 = vrcp.f32 %v648_v36  ;;  %vm652_vm12 = vcmp.gt.f32.partialorder %v648_v36, 0.0 }
 0x2a2   :  { %v897_v37 = vpop.eup %896 }
 0x2a3   :  { %v653_v40 = vsel %vm651_vm11, %v897_v37, inf }
 0x2a4   :  { %v655_v38 = vmul.f32 %v653_v40, %v627_v55  ;;  %v656_v39 = vmul.f32 %v653_v40, %v628_v52 }
 0x2a6   :  { %v659_v35 = vsel %vm1081_vm15, %v655_v38, 0.0  ;;  %v660_v41 = vsel %vm1075_vm13, %v656_v39, 0.0 }
 0x2a7   :  { %664 = vst.msk [vmem:[#allocation7 + $0x10] sm:$0xff] %vm400_vm1, %v659_v35  ;;  %665 = vst.msk [vmem:[#allocation7 + $0x18] sm:$0xff] %vm400_vm1, %v660_v41 }
 0x2aa   :  { %v899_v42 = vpop.eup %898 }
 0x2ab   :  { %v654_v43 = vsel %vm652_vm12, %v899_v42, inf }
 0x2ac   :  { %v657_v44 = vmul.f32 %v654_v43, %v629_v7  ;;  %v658_v45 = vmul.f32 %v654_v43, %v630_v5 }
 0x2ae   :  { %v661_v46 = vsel %vm1105_vm8, %v657_v44, 0.0  ;;  %v662_v17 = vsel %vm1099_vm7, %v658_v45, 0.0 }
 0x2af   :  { %666 = vst.msk [vmem:[#allocation7 + $0x30] sm:$0xff] %vm400_vm1, %v661_v46  ;;  %667 = vst.msk [vmem:[#allocation7 + $0x38] sm:$0xff] %vm400_vm1, %v662_v17 }
 0x2b0   :  { %955 = shalt.err (!%p952_p6)
}
 0x2b1   :  { %s956_s20 = scalar_lea.hbm %s1175_s3, 1024 }
 0x2b2   :  { %p957_p7 = scmp.ne.s32.totalorder %s1175_s3, %s956_s20  ;;  %p960_p8 = scmp.lt.u32.totalorder %s956_s20, %s1175_s3 }
 0x2b4   :  { %p962_p9 = pnand %p960_p8, %p957_p7 }
 0x2b6   :  { %965 = shalt.err (!%p962_p9)
}
 0x2b7   :  { %679 = dma.vmem_to_hbm [thread:$0]  %s674_s16, 1024, %s1175_s3, [#allocation4], %s973_s22, %s973_s22, %s974_s23  }
 0x2b8   :  { %970 = dma.done.wait [#allocation4], 1024  }
 0x2b9   :  { %971 = vsyncadd [#allocation4], 4294966272 }
 0x2ba   :  { %683 = vsyncpa [#allocation3], 1 }
 0x2bb   :  { %684 = vsyncpa [#allocation6], 1 }
 0x2bc   :  { %685 = vsyncpa [#allocation4], 1 }

</bundles_post_ra>
